<compile_context>
chip_gen: v6e
topology: v6e:2x2x1
jax: 0.10.0
libtpu: 0.0.40
codegen_flags: <defaults>
</compile_context>

<pallas_src>
import functools

import jax
import jax.numpy as jnp
from jax import lax
from jax.experimental import pallas as pl
from jax.experimental.pallas import tpu as pltpu


def _round_up(x, m):
    return ((x + m - 1) // m) * m


def _betas_kernel(enc_ref, w_ref, b_ref, out_ref):
    """out[n, m] = sum_k w[n, k] * enc[m, k] + b[n, 0]   (transposed output).

    enc_ref: [TM, nenc]   (f32 or bf16)
    w_ref:   [N16, nenc]  (f32 or bf16; rows >= num_betas are zero)
    b_ref:   [N16, 1]     (f32)
    out_ref: [N16, TM]    (f32)
    """
    # Contract the minor dim of both operands (NT matmul) -> MXU, f32 acc.
    acc = lax.dot_general(
        w_ref[...], enc_ref[...],
        dimension_numbers=(((1,), (1,)), ((), ())),
        preferred_element_type=jnp.float32)
    out_ref[...] = (acc + b_ref[...]).astype(out_ref.dtype)


def prepare_betas_params(weight, bias, *, sublane_pad=16, param_dtype=None):
    """One-time parameter prep (do at module init, never per forward).

    weight: [num_betas, nenc] (PyTorch nn.Linear layout), bias: [num_betas].
    Returns (w_pad [N16, nenc], b_pad [N16, 1]) with N16 = round_up(num_betas,
    sublane_pad).  param_dtype=jnp.bfloat16 halves weight HBM bytes; bias is
    kept in f32 so the bias add stays f32 (v5e has no bf16 VALU).
    """
    num_betas, nenc = weight.shape
    n16 = _round_up(num_betas, sublane_pad)
    w_dtype = param_dtype if param_dtype is not None else weight.dtype
    w_pad = jnp.zeros((n16, nenc), w_dtype).at[:num_betas, :].set(
        weight.astype(w_dtype))
    b_pad = jnp.zeros((n16, 1), jnp.float32).at[:num_betas, 0].set(
        bias.astype(jnp.float32))
    return w_pad, b_pad


def betas_predictor_forward(feat, enc_feat, w_prep, b_prep, num_betas, *,
                            block_m=None, return_transposed=False,
                            use_xla_for_tiny_batch=False):
    """Pallas equivalent of BetasPredictor.forward(feat, enc_feat).

    enc_feat may be f32 or bf16 (no cast is inserted here -- feed whatever the
    producer already stores).  Output is f32, matching nn.Linear.
    """
    del feat  # unused, exactly as in the reference forward
    B, nenc = enc_feat.shape
    n16, k_w = w_prep.shape
    assert k_w == nenc

    if use_xla_for_tiny_batch and B <= 128:
        # At B~2 this op is a few hundred FLOPs; the right move is to let XLA
        # fuse it with neighbouring heads rather than pay a pallas_call launch.
        betas = (jnp.dot(enc_feat, w_prep[:num_betas].T,
                         preferred_element_type=jnp.float32)
                 + b_prep[:num_betas, 0]).astype(jnp.float32)
        return betas.T if return_transposed else betas

    vmem = pltpu.MemorySpace.VMEM
    out_dtype = jnp.float32

    # Tile selection: big tiles (amortize per-step overhead), batch on the
    # 128-lane output axis => multiple of 128, and >=2 tiles for large B so
    # v7x's two TensorCores both get work.
    if block_m is None:
        block_m = min(2048, max(512, _round_up(pl.cdiv(B, 2), 128)))
    else:
        block_m = _round_up(block_m, 128)

    if B <= block_m:
        # Gridless single-tile path: whole arrays in VMEM, no grid/pipelining.
        out_t = pl.pallas_call(
            _betas_kernel,
            out_shape=jax.ShapeDtypeStruct((n16, B), out_dtype),
            in_specs=[
                pl.BlockSpec(memory_space=vmem),
                pl.BlockSpec(memory_space=vmem),
                pl.BlockSpec(memory_space=vmem),
            ],
            out_specs=pl.BlockSpec(memory_space=vmem),
        )(enc_feat, w_prep, b_prep)
    else:
        # Batch-tiled path.  No jnp.pad: Pallas masks the final partial block
        # (garbage OOB input rows only feed mul/add and their outputs are
        # discarded on store).
        num_tiles = pl.cdiv(B, block_m)
        out_t = pl.pallas_call(
            _betas_kernel,
            out_shape=jax.ShapeDtypeStruct((n16, B), out_dtype),
            grid=(num_tiles,),
            in_specs=[
                pl.BlockSpec((block_m, nenc), lambda i: (i, 0)),
                pl.BlockSpec((n16, nenc), lambda i: (0, 0)),   # resident weight
                pl.BlockSpec((n16, 1), lambda i: (0, 0)),      # resident bias
            ],
            out_specs=pl.BlockSpec((n16, block_m), lambda i: (0, i)),
            compiler_params=pltpu.CompilerParams(
                dimension_semantics=("parallel",)),  # v7x: split tiles over TCs
        )(enc_feat, w_prep, b_prep)

    if return_transposed:
        return out_t[:num_betas, :]          # [num_betas, B] for fused consumers
    # Keep this slice+transpose inside the caller's jit so XLA fuses it.
    return out_t[:num_betas, :].T            # [B, num_betas]


if __name__ == "__main__":
    # Module hyperparameters (small, consistent with the module's __init__).
    nz_feat = 32       # size of `feat` (unused by forward, kept for fidelity)
    nenc_feat = 64     # nn.Linear input features
    num_betas = 10     # nn.Linear output features
    batch = 2

    key = jax.random.PRNGKey(0)
    k_feat, k_enc, k_w, k_b, k_b300, k_b2560 = jax.random.split(key, 6)

    # Parameter init mirroring the model_mean=None branch:
    #   weight.data.normal_(0, 0.0001); bias.data.normal_(0, 0.0001)
    weight = 0.0001 * jax.random.normal(k_w, (num_betas, nenc_feat), jnp.float32)
    bias = 0.0001 * jax.random.normal(k_b, (num_betas,), jnp.float32)

    # One-time parameter preparation (hoisted out of the forward).
    w_prep, b_prep = prepare_betas_params(weight, bias)

    feat = jax.random.normal(k_feat, (batch, nz_feat), jnp.float32)
    enc_feat = jax.random.normal(k_enc, (batch, nenc_feat), jnp.float32)

    # --- 1. tiny batch (B=2): gridless single-tile Pallas path --------------
    fwd_small = jax.jit(lambda f, e: betas_predictor_forward(
        f, e, w_prep, b_prep, num_betas))
    betas = fwd_small(feat, enc_feat)
    jax.block_until_ready(betas)
    ref = enc_feat @ weight.T + bias
    assert betas.shape == (batch, num_betas)
    assert jnp.allclose(betas, ref, atol=1e-5, rtol=1e-5)

    # XLA-fused fallback recommended for production tiny-batch use.
    betas_xla = jax.jit(lambda f, e: betas_predictor_forward(
        f, e, w_prep, b_prep, num_betas, use_xla_for_tiny_batch=True))(
            feat, enc_feat)
    jax.block_until_ready(betas_xla)
    assert jnp.allclose(betas_xla, ref, atol=1e-5, rtol=1e-5)

    # --- 2. batched path, explicit block_m=256: grid of 2 tiles with a
    #        partial (masked) final block, no jnp.pad copy -------------------
    b300 = 300
    enc300 = jax.random.normal(k_b300, (b300, nenc_feat), jnp.float32)
    fwd_300 = jax.jit(lambda e: betas_predictor_forward(
        None, e, w_prep, b_prep, num_betas, block_m=256))
    betas300 = fwd_300(enc300)
    jax.block_until_ready(betas300)
    ref300 = enc300 @ weight.T + bias
    assert betas300.shape == (b300, num_betas)
    assert jnp.allclose(betas300, ref300, atol=1e-5, rtol=1e-5)

    # --- 3. batched path, auto block_m (-> 1280, two even tiles) ------------
    b2560 = 2560
    enc2560 = jax.random.normal(k_b2560, (b2560, nenc_feat), jnp.float32)
    fwd_auto = jax.jit(lambda e: betas_predictor_forward(
        None, e, w_prep, b_prep, num_betas))
    betas2560 = fwd_auto(enc2560)
    jax.block_until_ready(betas2560)
    ref2560 = enc2560 @ weight.T + bias
    assert betas2560.shape == (b2560, num_betas)
    assert jnp.allclose(betas2560, ref2560, atol=1e-5, rtol=1e-5)

    # --- 4. bf16 params + bf16 activations (halved input HBM bytes),
    #        f32 MXU accumulation and f32 bias add ---------------------------
    w_prep_bf, b_prep_bf = prepare_betas_params(
        weight, bias, param_dtype=jnp.bfloat16)
    enc2560_bf = enc2560.astype(jnp.bfloat16)
    fwd_bf = jax.jit(lambda e: betas_predictor_forward(
        None, e, w_prep_bf, b_prep_bf, num_betas))
    betas_bf = fwd_bf(enc2560_bf)
    jax.block_until_ready(betas_bf)
    ref_bf = (enc2560_bf.astype(jnp.float32)
              @ weight.astype(jnp.bfloat16).astype(jnp.float32).T + bias)
    assert betas_bf.shape == (b2560, num_betas)
    assert jnp.allclose(betas_bf, ref_bf, atol=1e-5, rtol=1e-5)

    print("KERNEL_OK")
</pallas_src>

<mosaic_0001>
module attributes {stable_mosaic.version = 11 : i64} {
  func.func @_betas_kernel(%arg0: memref<2x64xf32, #tpu.memory_space<vmem>>, %arg1: memref<16x64xf32, #tpu.memory_space<vmem>>, %arg2: memref<16x1xf32, #tpu.memory_space<vmem>>, %arg3: memref<16x2xf32, #tpu.memory_space<vmem>>) attributes {dimension_semantics = [], scalar_prefetch = 0 : i64, scratch_operands = 0 : i64, tpu.core_type = #tpu.core_type<tc>} {
    %c0 = arith.constant 0 : index
    %c0_0 = arith.constant 0 : index
    %0 = vector.load %arg1[%c0, %c0_0] : memref<16x64xf32, #tpu.memory_space<vmem>>, vector<16x64xf32>
    %c0_1 = arith.constant 0 : index
    %c0_2 = arith.constant 0 : index
    %1 = vector.load %arg0[%c0_1, %c0_2] : memref<2x64xf32, #tpu.memory_space<vmem>>, vector<2x64xf32>
    %cst = arith.constant dense<0.000000e+00> : vector<16x2xf32>
    %2 = tpu.matmul %0, %1, %cst {dimension_numbers = #tpu.dot_dimension_numbers<[1], [1], [0], [0], [0, 0, 1, 0], [], []>} : vector<16x64xf32>, vector<2x64xf32>, vector<16x2xf32> -> vector<16x2xf32>
    %c0_3 = arith.constant 0 : index
    %c0_4 = arith.constant 0 : index
    %3 = vector.load %arg2[%c0_3, %c0_4] : memref<16x1xf32, #tpu.memory_space<vmem>>, vector<16x1xf32>
    %4 = vector.broadcast %3 : vector<16x1xf32> to vector<16x2xf32>
    %5 = arith.addf %2, %4 : vector<16x2xf32>
    %c0_5 = arith.constant 0 : index
    %c0_6 = arith.constant 0 : index
    %6 = vector.load %arg3[%c0_5, %c0_6] : memref<16x2xf32, #tpu.memory_space<vmem>>, vector<16x2xf32>
    tpu.vector_store %arg3[%c0_5, %c0_6], %5 {strides = array<i32>} : memref<16x2xf32, #tpu.memory_space<vmem>>, vector<16x2xf32>,
    return
  }
}

</mosaic_0001>

<bundles_post_ra>
// kernel: _lambda_.1
= control target key start
LH: loop header
LB: loop body
LE: loop exit
PB: predicated region body
PF: predicated region fallthrough
CT: control target
= control target key end

     0   :  { %8 = vsyncpa [#allocation3], 0  ;;  %s285_s0 = inlined_call_operand.hbm [shape: f32[2,64], index: 0, kind: input, shape index: {}]   ;;  %s286_s1 = inlined_call_operand.hbm [shape: f32[16,64], index: 1, kind: input, shape index: {}]   ;;  %s287_s2 = inlined_call_operand.hbm [shape: f32[16,1], index: 2, kind: input, shape index: {}]   ;;  %s288_s3 = inlined_call_operand.vmem [shape: f32[16,2], index: 3, kind: output, shape index: {}]  }
   0x1   :  { %9 = vsyncpa [#allocation5], 0  ;;  %s244_s12 = smov [#allocation4]  }
   0x2   :  { %s25_s13 = sshll.u32 %s244_s12, 4  ;;  %s26_s13 = int_to_ptr.vmem [resolvable:$true] %s25_s13 }
   0x3   :  { %s188_s14 = scalar_lea.vmem %s26_s13, 256  ;;  %p193_p1 = scmp.lt.s32.totalorder %s26_s13, %s26_s13 }
   0x4   :  { %p189_p0 = scmp.ne.s32.totalorder %s26_s13, %s188_s14  ;;  %p194_p2 = scmp.lt.s32.totalorder %s188_s14, %s188_s14 }
   0x6   :  { %p195_p3 = por %p194_p2, %p193_p1 }
   0x8   :  { %p196_p4 = pnand %p195_p3, %p189_p0 }
   0xa   :  { %199 = shalt.err (!%p196_p4)
}
   0xb   :  { %s245_s15 = smov 128   ;;  %s246_s16 = smov 8  }
   0xc   :  { %31 = dma.hbm_to_vmem [thread:$0]  %s286_s1, 256, %s26_s13, [#allocation5], %s245_s15, %s245_s15, %s246_s16  }
   0xd   :  { %s247_s19 = smov [#allocation2]   ;;  %s248_s21 = smov [#allocation6]  }
   0xe   :  { %s16_s20 = sshll.u32 %s247_s19, 4  ;;  %s37_s22 = sshll.u32 %s248_s21, 4  ;;  %s17_s20 = int_to_ptr.vmem [resolvable:$true] %s16_s20  ;;  %s38_s22 = int_to_ptr.vmem [resolvable:$true] %s37_s22 }
   0xf   :  { %s208_s23 = scalar_lea.vmem %s17_s20, 32  ;;  %p213_p6 = scmp.lt.s32.totalorder %s17_s20, %s17_s20 }
  0x10   :  { %p209_p5 = scmp.ne.s32.totalorder %s17_s20, %s208_s23  ;;  %p214_p7 = scmp.lt.s32.totalorder %s208_s23, %s208_s23 }
  0x12   :  { %p215_p8 = por %p214_p7, %p213_p6 }
  0x14   :  { %p216_p9 = pnand %p215_p8, %p209_p5 }
  0x16   :  { %219 = shalt.err (!%p216_p9)
}
  0x17   :  { %19 = dma.hbm_to_vmem [thread:$0]  %s285_s0, 32, %s17_s20, [#allocation3]  }
  0x18   :  { %s228_s26 = scalar_lea.vmem %s38_s22, 256  ;;  %p233_p11 = scmp.lt.s32.totalorder %s38_s22, %s38_s22 }
  0x19   :  { %p229_p10 = scmp.ne.s32.totalorder %s38_s22, %s228_s26  ;;  %p234_p12 = scmp.lt.s32.totalorder %s228_s26, %s228_s26 }
  0x1b   :  { %p235_p13 = por %p234_p12, %p233_p11 }
  0x1d   :  { %p236_p0 = pnand %p235_p13, %p229_p10 }
  0x1f   :  { %239 = shalt.err (!%p236_p0)
}
  0x20   :  { %43 = dma.hbm_to_vmem [thread:$0]  %s287_s2, 256, %s38_s22, [#allocation5], %s245_s15, %s245_s15, %s246_s16  }
  0x21   :  { %240 = dma.done.wait [#allocation3], 32  }
  0x22   :  { %241 = vsyncadd [#allocation3], 4294967264 }
  0x23   :  { %242 = dma.done.wait [#allocation5], 512  }
  0x24   :  { %243 = vsyncadd [#allocation5], 4294966784  ;;  %v249_v0 = vmov 0   ;;  %vm68_vm0 = vcmask 523264   ;;  %v55_v1 = vld [vmem:[#allocation2] sm:$0x3] }
  0x25   :  { %179 = vset.pattern.permute.xlu0 %v249_v0  ;;  %v53_v2 = vld [vmem:[#allocation4] sm:$0xff]  ;;  %168 = vmatprep.subr.msk.mxu0 %vm68_vm0, %v55_v1  ;;  %v56_v3 = vld [vmem:[#allocation6] sm:$0xff]  ;;  %v54_v4 = vld [vmem:[#allocation4 + $0x8] sm:$0xff]  ;;  %vm153_vm1 = vcmask 15360  }
  0x26   :  { %170 = vmatprep.mubr.msk.f32.mxu0 %vm68_vm0, %v53_v2  ;;  %169 = vmatpush3.xpose.msk.msra.mxu0 %vm68_vm0, %v55_v1  ;;  %v57_v5 = vld [vmem:[#allocation6 + $0x8] sm:$0xff] }
  0x27   :  { %60 = vperm.xlu0 %179, %v56_v3  }
  0x29   :  { %171 = vmatmul.mubr.msk.f32.vlgmr.msra.gmra.mxu0 %vm68_vm0, %v54_v4 }
  0x2b   :  { %65 = vperm.xlu0 %179, %v57_v5  }
  0xa2   :  { %v61_v6 = vpop.permute.xlu0 %60 }
  0xa6   :  { %v66_v7 = vpop.permute.xlu0 %65 }
  0xe9   :  { %v172_v8 = vpop.f32.mrf.mxu0 }
  0xea   :  { %v150_v9 = vadd.f32 %v172_v8, %v66_v7 }
  0xeb   :  { %v144_v10 = vpop.f32.mrf.mxu0 }
  0xec   :  { %155 = vst.msk [vmem:[%s288_s3 + $0x8] sm:$0xff] %vm153_vm1, %v150_v9  ;;  %v145_v11 = vadd.f32 %v144_v10, %v61_v6 }
  0xee   :  { %154 = vst.msk [vmem:[%s288_s3] sm:$0xff] %vm153_vm1, %v145_v11 }
  0xef   :  { %160 = vsyncpa [#allocation3], 1 }
  0xf0   :  { %161 = vsyncpa [#allocation5], 1 }

</bundles_post_ra>
